<compile_context>
chip_gen: v7x
topology: tpu7x:2x2x1
jax: 0.10.0
libtpu: 0.0.40
codegen_flags: <defaults>
</compile_context>

<pallas_src>
import functools
import math

import jax
import jax.numpy as jnp
from jax.experimental import pallas as pl
from jax.experimental.pallas import tpu as pltpu


def _dice_partial_kernel(pred_ref, gt_ref, tp_ref, den_ref, *,
                         tile_s, num_full, rem, tiles_per_split,
                         rows, row_blk):
    """Accumulate per-row partial sums of p*g and p+g over the current spatial
    tile into (rows, 128) output blocks resident across the 'arbitrary' axis."""
    s = pl.program_id(0)   # split index ("parallel" -> TC sharding on v7x)
    k = pl.program_id(1)   # tile index within the split ("arbitrary")

    @pl.when(k == 0)
    def _init():
        tp_ref[...] = jnp.zeros_like(tp_ref)
        den_ref[...] = jnp.zeros_like(den_ref)

    # NOTE: this guard must stay in sync with the in_idx clamp in the wrapper
    # (padded grid steps DMA a clamped tile but must not accumulate it).
    gtile = s * tiles_per_split + k

    def accumulate(valid_cols):
        # valid_cols is a static (Python) number of valid columns in the tile.
        n_chunks = valid_cols // 128
        tail = valid_cols % 128
        unroll = 8 if row_blk <= 32 else 4
        # Row strips bound vreg pressure for large N*C; for typical NC the whole
        # row range is a single strip.
        for r0 in range(0, rows, row_blk):
            rb = min(row_blk, rows - r0)
            rsl = pl.ds(r0, rb)
            tp = tp_ref[rsl, :]
            den = den_ref[rsl, :]

            def chunk(j, carry, rsl=rsl):
                tp_c, den_c = carry
                off = pl.multiple_of(j * 128, 128)
                pj = pred_ref[rsl, pl.ds(off, 128)].astype(jnp.float32)
                gj = gt_ref[rsl, pl.ds(off, 128)].astype(jnp.float32)
                return tp_c + pj * gj, den_c + (pj + gj)

            if n_chunks > 0:
                tp, den = jax.lax.fori_loop(
                    0, n_chunks, chunk, (tp, den),
                    unroll=max(1, min(unroll, n_chunks)))

            if tail:
                # Ragged last chunk: mask out-of-bounds lanes (Pallas gives no
                # guarantee about the padded part of a partial block).
                off = n_chunks * 128
                pj = pred_ref[rsl, pl.ds(off, 128)].astype(jnp.float32)
                gj = gt_ref[rsl, pl.ds(off, 128)].astype(jnp.float32)
                lane = jax.lax.broadcasted_iota(jnp.int32, pj.shape, 1)
                keep = lane < tail
                pj = jnp.where(keep, pj, 0.0)
                gj = jnp.where(keep, gj, 0.0)
                tp = tp + pj * gj
                den = den + (pj + gj)

            tp_ref[rsl, :] = tp
            den_ref[rsl, :] = den

    # Fully-valid tiles: no masking on the hot path.
    if num_full > 0:
        @pl.when(gtile < num_full)
        def _full():
            accumulate(tile_s)

    # Ragged last tile.
    if rem:
        @pl.when(gtile == num_full)
        def _partial():
            accumulate(rem)
    # gtile >= num_tiles (padded steps of the last split) accumulate nothing.


def _tpu_generation_params():
    """Generation-aware VMEM budget and TensorCore count."""
    kind = ""
    try:
        dev = jax.devices()[0]
        if dev.platform == "tpu":
            kind = dev.device_kind.lower()
    except Exception:
        pass
    if "v7" in kind or "7x" in kind:
        # 64 MiB physical VMEM per TensorCore, 2 TCs per chip.
        return {"vmem_limit_bytes": 48 * 1024 * 1024, "num_cores": 2}
    if kind:
        # v4/v5e/v5p/v6e: 128 MiB physical VMEM, single core per Pallas grid.
        return {"vmem_limit_bytes": 64 * 1024 * 1024, "num_cores": 1}
    # Unknown backend (e.g. interpret mode): stay conservative.
    return {"vmem_limit_bytes": 32 * 1024 * 1024, "num_cores": 1}


def _fold_rows(NC, S):
    """Fold factor r so that NC*r is a multiple of 8 (full sublane packing)."""
    if NC % 8 == 0:
        return 1
    r = 8 // math.gcd(NC, 8)
    if r > 1 and S % r == 0:
        return r
    return 1


def _pick_tile_s(rows, S, itemsize, vmem_limit_bytes):
    """Largest spatial tile (multiple of 128 lanes) such that 2 inputs x 2
    pipeline buffers fit in ~70% of the VMEM budget."""
    rows_pad = pl.cdiv(max(rows, 1), 8) * 8      # sublane padding in VMEM
    per_block_budget = int(vmem_limit_bytes * 0.70) // 4
    lanes = per_block_budget // max(rows_pad * itemsize, 1)
    lanes = max(128, (lanes // 128) * 128)
    s128 = pl.cdiv(S, 128) * 128
    return int(min(lanes, s128))


def dice_loss(mask_pred, mask_gt, *, smooth=0.0, epsilon=0.0,
              fg_only=False, bg_channel=0, tile_s=None, num_splits=None,
              vmem_limit_bytes=None):
    """Pallas implementation of DiceLoss.forward (soft=True, reduction='mean')."""
    assert mask_pred.shape == mask_gt.shape
    N, C = mask_pred.shape[0], mask_pred.shape[1]
    S = 1
    for d in mask_pred.shape[2:]:
        S *= d
    NC = N * C

    gen = _tpu_generation_params()
    if vmem_limit_bytes is None:
        vmem_limit_bytes = gen["vmem_limit_bytes"]

    # Sublane folding for small / non-multiple-of-8 NC: (NC, S) -> (NC*r, S/r).
    fold = _fold_rows(NC, S)
    R = NC * fold
    Sf = S // fold

    # Pure reshapes (no copy); input dtype is kept (bf16 halves HBM traffic).
    pred = mask_pred.reshape(R, Sf)
    gt = mask_gt.reshape(R, Sf)

    itemsize = max(jnp.dtype(pred.dtype).itemsize, jnp.dtype(gt.dtype).itemsize)
    if tile_s is None:
        tile_s = _pick_tile_s(R, Sf, itemsize, vmem_limit_bytes)
    tile_s = max(128, (int(tile_s) // 128) * 128)

    num_tiles = pl.cdiv(Sf, tile_s)
    if num_splits is None:
        num_splits = gen["num_cores"]
    num_splits = max(1, min(int(num_splits), num_tiles))
    # Balance the split: an unbalanced split costs one redundant (clamped) tile
    # DMA per padded step; only accept that when the reduction is long enough.
    if num_splits > 1 and num_tiles % num_splits != 0 and num_tiles < 4 * num_splits:
        num_splits = 1

    tiles_per_split = pl.cdiv(num_tiles, num_splits)
    num_full = Sf // tile_s
    rem = Sf % tile_s

    kernel = functools.partial(
        _dice_partial_kernel,
        tile_s=tile_s, num_full=num_full, rem=rem,
        tiles_per_split=tiles_per_split, rows=R, row_blk=min(R, 64))

    def in_idx(split, k):
        g = split * tiles_per_split + k
        # Clamp padded grid steps so the DMA stays in bounds; the kernel's
        # gtile guard skips accumulation for them.
        return (0, jnp.minimum(g, num_tiles - 1))

    def out_idx(split, k):
        return (0, split)

    tp_part, den_part = pl.pallas_call(
        kernel,
        out_shape=(
            jax.ShapeDtypeStruct((R, 128 * num_splits), jnp.float32),
            jax.ShapeDtypeStruct((R, 128 * num_splits), jnp.float32),
        ),
        grid_spec=pltpu.PrefetchScalarGridSpec(
            num_scalar_prefetch=0,
            grid=(num_splits, tiles_per_split),
            in_specs=[
                pl.BlockSpec((R, tile_s), in_idx),
                pl.BlockSpec((R, tile_s), in_idx),
            ],
            out_specs=[
                pl.BlockSpec((R, 128), out_idx),
                pl.BlockSpec((R, 128), out_idx),
            ],
        ),
        compiler_params=pltpu.CompilerParams(
            dimension_semantics=("parallel", "arbitrary"),
            vmem_limit_bytes=int(vmem_limit_bytes),
        ),
    )(pred, gt)

    # O(N*C) epilogue in plain JAX: lane reduce, un-fold, dice, nanmean, loss.
    tp = tp_part.sum(axis=-1)
    den = den_part.sum(axis=-1)
    if fold > 1:
        tp = tp.reshape(NC, fold).sum(axis=-1)
        den = den.reshape(NC, fold).sum(axis=-1)
    tp = tp.reshape(N, C)
    den = den.reshape(N, C)
    dices = (2.0 * tp + smooth) / (den + smooth + epsilon)   # NaN on 0/0, as in torch

    if fg_only:
        keep = (jnp.arange(C) != bg_channel)[None, :]
    else:
        keep = jnp.ones((1, C), dtype=bool)
    valid = jnp.logical_and(keep, jnp.logical_not(jnp.isnan(dices)))
    dsum = jnp.sum(jnp.where(valid, dices, 0.0))
    dcnt = jnp.sum(valid.astype(jnp.float32))
    mean_dice = dsum / dcnt        # NaN if every kept dice is NaN (torch.nanmean)
    return 1.0 - mean_dice


def dice_loss_ref(mask_pred, mask_gt, *, smooth=0.0, epsilon=0.0,
                  fg_only=False, bg_channel=0):
    """Pure-JAX reference mirroring the PyTorch dice_score/DiceLoss."""
    N, C = mask_pred.shape[0], mask_pred.shape[1]
    p = mask_pred.reshape(N, C, -1).astype(jnp.float32)
    g = mask_gt.reshape(N, C, -1).astype(jnp.float32)
    tp = jnp.sum(p * g, axis=-1)
    tp_fp = jnp.sum(p, axis=-1)
    tp_fn = jnp.sum(g, axis=-1)
    dices = (2 * tp + smooth) / (tp_fp + tp_fn + smooth + epsilon)
    if fg_only:
        keep = (jnp.arange(C) != bg_channel)[None, :]
    else:
        keep = jnp.ones((1, C), dtype=bool)
    valid = keep & ~jnp.isnan(dices)
    mean = jnp.sum(jnp.where(valid, dices, 0.0)) / jnp.sum(valid.astype(jnp.float32))
    return 1.0 - mean


if __name__ == "__main__":
    # DiceLoss has no learnable parameters; smooth/epsilon/fg_only are set here.
    smooth, epsilon, fg_only = 0.0, 0.0, False

    key = jax.random.PRNGKey(0)
    k1, k2 = jax.random.split(key)

    # Main case: NCHW, softmax scores vs one-hot ground truth.
    N, C, H, W = 2, 4, 16, 16
    logits = jax.random.normal(k1, (N, C, H, W), dtype=jnp.float32)
    mask_pred = jax.nn.softmax(logits, axis=1)
    labels = jax.random.randint(k2, (N, H, W), 0, C)
    mask_gt = jax.nn.one_hot(labels, C, dtype=jnp.float32).transpose(0, 3, 1, 2)

    loss = dice_loss(mask_pred, mask_gt, smooth=smooth, epsilon=epsilon,
                     fg_only=fg_only)
    loss = jax.block_until_ready(loss)
    ref = dice_loss_ref(mask_pred, mask_gt, smooth=smooth, epsilon=epsilon,
                        fg_only=fg_only)
    assert jnp.allclose(loss, ref, atol=1e-5, rtol=1e-5), (loss, ref)

    # Non-128-aligned spatial size + fg_only (ragged tile masked in-kernel).
    H2, W2 = 17, 11
    logits2 = jax.random.normal(k1, (N, C, H2, W2), dtype=jnp.float32)
    mp2 = jax.nn.softmax(logits2, axis=1)
    lb2 = jax.random.randint(k2, (N, H2, W2), 0, C)
    mg2 = jax.nn.one_hot(lb2, C, dtype=jnp.float32).transpose(0, 3, 1, 2)
    loss2 = jax.block_until_ready(dice_loss(mp2, mg2, fg_only=True))
    ref2 = dice_loss_ref(mp2, mg2, fg_only=True)
    assert jnp.allclose(loss2, ref2, atol=1e-5, rtol=1e-5), (loss2, ref2)

    # Small N*C (not a multiple of 8): exercises the sublane-folding path.
    N3, C3, H3, W3 = 1, 3, 8, 8
    logits3 = jax.random.normal(k1, (N3, C3, H3, W3), dtype=jnp.float32)
    mp3 = jax.nn.softmax(logits3, axis=1)
    lb3 = jax.random.randint(k2, (N3, H3, W3), 0, C3)
    mg3 = jax.nn.one_hot(lb3, C3, dtype=jnp.float32).transpose(0, 3, 1, 2)
    loss3 = jax.block_until_ready(dice_loss(mp3, mg3))
    ref3 = dice_loss_ref(mp3, mg3)
    assert jnp.allclose(loss3, ref3, atol=1e-5, rtol=1e-5), (loss3, ref3)

    print("KERNEL_OK")
</pallas_src>

<mosaic_0001>
module attributes {stable_mosaic.version = 11 : i64} {
  func.func @_dice_partial_kernel(%arg0: i32, %arg1: i32, %arg2: memref<8x256xf32, #tpu.memory_space<vmem>>, %arg3: memref<8x256xf32, #tpu.memory_space<vmem>>, %arg4: memref<8x128xf32, #tpu.memory_space<vmem>>, %arg5: memref<8x128xf32, #tpu.memory_space<vmem>>) attributes {dimension_semantics = [#tpu.dimension_semantics<parallel>, #tpu.dimension_semantics<arbitrary>], iteration_bounds = array<i64: 1, 1>, scalar_prefetch = 0 : i64, scratch_operands = 0 : i64, tpu.core_type = #tpu.core_type<tc>, window_params = [{transform_indices = @transform_0, window_bounds = array<i64: 8, 256>}, {transform_indices = @transform_1, window_bounds = array<i64: 8, 256>}, {transform_indices = @transform_2, window_bounds = array<i64: 8, 128>}, {transform_indices = @transform_3, window_bounds = array<i64: 8, 128>}]} {
    %c0_i32 = arith.constant 0 : i32
    %0 = arith.cmpi eq, %arg1, %c0_i32 : i32
    %1 = arith.extui %0 : i1 to i32
    %c0_i32_0 = arith.constant 0 : i32
    %2 = arith.cmpi ne, %1, %c0_i32_0 : i32
    scf.if %2 {
      %cst = arith.constant 0.000000e+00 : f32
      %8 = vector.broadcast %cst : f32 to vector<8x128xf32>
      %c0 = arith.constant 0 : index
      %c0_3 = arith.constant 0 : index
      %9 = vector.load %arg4[%c0, %c0_3] : memref<8x128xf32, #tpu.memory_space<vmem>>, vector<8x128xf32>
      tpu.vector_store %arg4[%c0, %c0_3], %8 {strides = array<i32>} : memref<8x128xf32, #tpu.memory_space<vmem>>, vector<8x128xf32>,
      %cst_4 = arith.constant 0.000000e+00 : f32
      %10 = vector.broadcast %cst_4 : f32 to vector<8x128xf32>
      %c0_5 = arith.constant 0 : index
      %c0_6 = arith.constant 0 : index
      %11 = vector.load %arg5[%c0_5, %c0_6] : memref<8x128xf32, #tpu.memory_space<vmem>>, vector<8x128xf32>
      tpu.vector_store %arg5[%c0_5, %c0_6], %10 {strides = array<i32>} : memref<8x128xf32, #tpu.memory_space<vmem>>, vector<8x128xf32>,
    } else {
    }
    %c1_i32 = arith.constant 1 : i32
    %3 = arith.muli %arg0, %c1_i32 : i32
    %4 = arith.addi %3, %arg1 : i32
    %c1_i32_1 = arith.constant 1 : i32
    %5 = arith.cmpi slt, %4, %c1_i32_1 : i32
    %6 = arith.extui %5 : i1 to i32
    %c0_i32_2 = arith.constant 0 : i32
    %7 = arith.cmpi ne, %6, %c0_i32_2 : i32
    scf.if %7 {
      %c0 = arith.constant 0 : index
      %c0_3 = arith.constant 0 : index
      %8 = vector.load %arg4[%c0, %c0_3] : memref<8x128xf32, #tpu.memory_space<vmem>>, vector<8x128xf32>
      %c0_4 = arith.constant 0 : index
      %c0_5 = arith.constant 0 : index
      %9 = vector.load %arg5[%c0_4, %c0_5] : memref<8x128xf32, #tpu.memory_space<vmem>>, vector<8x128xf32>
      %c0_i32_6 = arith.constant 0 : i32
      %c128_i32 = arith.constant 128 : i32
      %10 = arith.muli %c0_i32_6, %c128_i32 : i32
      %11 = tpu.assume_multiple %10, 128 : i32
      %c0_7 = arith.constant 0 : index
      %12 = arith.index_cast %11 : i32 to index
      %13 = vector.load %arg2[%c0_7, %12] : memref<8x256xf32, #tpu.memory_space<vmem>>, vector<8x128xf32>
      %c0_8 = arith.constant 0 : index
      %14 = arith.index_cast %11 : i32 to index
      %15 = vector.load %arg3[%c0_8, %14] : memref<8x256xf32, #tpu.memory_space<vmem>>, vector<8x128xf32>
      %16 = arith.mulf %13, %15 : vector<8x128xf32>
      %17 = arith.addf %8, %16 : vector<8x128xf32>
      %18 = arith.addf %13, %15 : vector<8x128xf32>
      %19 = arith.addf %9, %18 : vector<8x128xf32>
      %c1_i32_9 = arith.constant 1 : i32
      %c128_i32_10 = arith.constant 128 : i32
      %20 = arith.muli %c1_i32_9, %c128_i32_10 : i32
      %21 = tpu.assume_multiple %20, 128 : i32
      %c0_11 = arith.constant 0 : index
      %22 = arith.index_cast %21 : i32 to index
      %23 = vector.load %arg2[%c0_11, %22] : memref<8x256xf32, #tpu.memory_space<vmem>>, vector<8x128xf32>
      %c0_12 = arith.constant 0 : index
      %24 = arith.index_cast %21 : i32 to index
      %25 = vector.load %arg3[%c0_12, %24] : memref<8x256xf32, #tpu.memory_space<vmem>>, vector<8x128xf32>
      %26 = arith.mulf %23, %25 : vector<8x128xf32>
      %27 = arith.addf %17, %26 : vector<8x128xf32>
      %28 = arith.addf %23, %25 : vector<8x128xf32>
      %29 = arith.addf %19, %28 : vector<8x128xf32>
      %c2_i32 = arith.constant 2 : i32
      %c0_13 = arith.constant 0 : index
      %c0_14 = arith.constant 0 : index
      %30 = vector.load %arg4[%c0_13, %c0_14] : memref<8x128xf32, #tpu.memory_space<vmem>>, vector<8x128xf32>
      tpu.vector_store %arg4[%c0_13, %c0_14], %27 {strides = array<i32>} : memref<8x128xf32, #tpu.memory_space<vmem>>, vector<8x128xf32>,
      %c0_15 = arith.constant 0 : index
      %c0_16 = arith.constant 0 : index
      %31 = vector.load %arg5[%c0_15, %c0_16] : memref<8x128xf32, #tpu.memory_space<vmem>>, vector<8x128xf32>
      tpu.vector_store %arg5[%c0_15, %c0_16], %29 {strides = array<i32>} : memref<8x128xf32, #tpu.memory_space<vmem>>, vector<8x128xf32>,
    } else {
    }
    return
  }
  func.func @transform_0(%arg0: i32, %arg1: i32) -> (i32, i32) {
    %c1_i32 = arith.constant 1 : i32
    %0 = arith.muli %arg0, %c1_i32 : i32
    %1 = arith.addi %0, %arg1 : i32
    %c0_i32 = arith.constant 0 : i32
    %2 = arith.minsi %1, %c0_i32 : i32
    %c0_i32_0 = arith.constant 0 : i32
    %c0_i32_1 = arith.constant 0 : i32
    return %c0_i32_0, %2 : i32, i32
  }
  func.func @transform_1(%arg0: i32, %arg1: i32) -> (i32, i32) {
    %c1_i32 = arith.constant 1 : i32
    %0 = arith.muli %arg0, %c1_i32 : i32
    %1 = arith.addi %0, %arg1 : i32
    %c0_i32 = arith.constant 0 : i32
    %2 = arith.minsi %1, %c0_i32 : i32
    %c0_i32_0 = arith.constant 0 : i32
    %c0_i32_1 = arith.constant 0 : i32
    return %c0_i32_0, %2 : i32, i32
  }
  func.func @transform_2(%arg0: i32, %arg1: i32) -> (i32, i32) {
    %c0_i32 = arith.constant 0 : i32
    %c0_i32_0 = arith.constant 0 : i32
    return %c0_i32, %arg0 : i32, i32
  }
  func.func @transform_3(%arg0: i32, %arg1: i32) -> (i32, i32) {
    %c0_i32 = arith.constant 0 : i32
    %c0_i32_0 = arith.constant 0 : i32
    return %c0_i32, %arg0 : i32, i32
  }
}

</mosaic_0001>

<bundles_post_ra>
// kernel: tpu_custom_call.1
= control target key start
LH: loop header
LB: loop body
LE: loop exit
PB: predicated region body
PF: predicated region fallthrough
CT: control target
= control target key end

     0   :  { %9 = vsyncpa [#allocation3], 0  ;;  %s295_s0 = inlined_call_operand.hbm [shape: f32[8,256], index: 0, kind: input, shape index: {}]   ;;  %s296_s1 = inlined_call_operand.hbm [shape: f32[8,256], index: 1, kind: input, shape index: {}]   ;;  %s297_s2 = inlined_call_operand.hbm [shape: f32[8,128], index: 2, kind: output, shape index: {0}]   ;;  %s298_s3 = inlined_call_operand.hbm [shape: f32[8,128], index: 3, kind: output, shape index: {1}]  }
   0x1   :  { %10 = vsyncpa [#allocation6], 0 }
   0x2   :  { %11 = vsyncpa [#allocation4], 0 }
   0x3   :  { %12 = vsyncpa [#allocation9], 0  ;;  %s223_s12 = smov [#allocation2]   ;;  %s224_s14 = smov [#allocation5]  }
   0x4   :  { %s25_s13 = sshll.u32 %s223_s12, 4  ;;  %s41_s15 = sshll.u32 %s224_s14, 4  ;;  %s26_s13 = int_to_ptr.vmem [resolvable:$true] %s25_s13  ;;  %s42_s15 = int_to_ptr.vmem [resolvable:$true] %s41_s15 }
   0x5   :  { %s127_s18 = scalar_lea.hbm %s295_s0, 256 }
   0x6   :  { %p128_p0 = scmp.ne.s32.totalorder %s295_s0, %s127_s18  ;;  %p131_p1 = scmp.lt.u32.totalorder %s127_s18, %s295_s0 }
   0x8   :  { %p133_p2 = pnand %p131_p1, %p128_p0 }
   0xa   :  { %136 = shalt.err (!%p133_p2)
}
   0xb   :  { %s137_s23 = scalar_lea.vmem %s26_s13, 256  ;;  %p142_p4 = scmp.lt.s32.totalorder %s26_s13, %s26_s13 }
   0xc   :  { %p138_p3 = scmp.ne.s32.totalorder %s26_s13, %s137_s23  ;;  %p143_p5 = scmp.lt.s32.totalorder %s137_s23, %s137_s23 }
   0xe   :  { %p144_p6 = por %p143_p5, %p142_p4 }
  0x10   :  { %p145_p7 = pnand %p144_p6, %p138_p3 }
  0x12   :  { %148 = shalt.err (!%p145_p7)
}
  0x13   :  { %28 = dma.hbm_to_vmem [thread:$0]  %s295_s0, 256, %s26_s13, [#allocation3]  }
  0x14   :  { %s149_s28 = scalar_lea.hbm %s296_s1, 256 }
  0x15   :  { %p150_p8 = scmp.ne.s32.totalorder %s296_s1, %s149_s28  ;;  %p153_p9 = scmp.lt.u32.totalorder %s149_s28, %s296_s1 }
  0x17   :  { %p155_p10 = pnand %p153_p9, %p150_p8 }
  0x19   :  { %158 = shalt.err (!%p155_p10)
}
  0x1a   :  { %s159_s6 = scalar_lea.vmem %s42_s15, 256  ;;  %p164_p12 = scmp.lt.s32.totalorder %s42_s15, %s42_s15 }
  0x1b   :  { %p160_p11 = scmp.ne.s32.totalorder %s42_s15, %s159_s6  ;;  %p165_p13 = scmp.lt.s32.totalorder %s159_s6, %s159_s6 }
  0x1d   :  { %p166_p0 = por %p165_p13, %p164_p12 }
  0x1f   :  { %p167_p1 = pnand %p166_p0, %p160_p11 }
  0x21   :  { %170 = shalt.err (!%p167_p1)
}
  0x22   :  { %44 = dma.hbm_to_vmem [thread:$0]  %s296_s1, 256, %s42_s15, [#allocation6]  }
  0x23   :  { %215 = dma.done.wait [#allocation3], 256  }
  0x24   :  { %216 = vsyncadd [#allocation3], 4294967040 }
  0x25   :  { %217 = dma.done.wait [#allocation6], 256  }
  0x26   :  { %218 = vsyncadd [#allocation6], 4294967040  ;;  %v72_v0 = vld [vmem:[#allocation2] sm:$0xff]  ;;  %v73_v1 = vld [vmem:[#allocation5] sm:$0xff]  ;;  %s225_s8 = smov [#allocation7]   ;;  %s226_s10 = smov [#allocation8]  }
  0x27   :  { %v79_v2 = vld [vmem:[#allocation2 + $0x8] sm:$0xff]  ;;  %v74_v3 = vmul.f32 %v73_v1, %v72_v0  ;;  %v81_v4 = vld [vmem:[#allocation5 + $0x8] sm:$0xff]  ;;  %v76_v5 = vadd.f32 %v73_v1, %v72_v0  ;;  %s94_s9 = sshll.u32 %s225_s8, 4  ;;  %s104_s11 = sshll.u32 %s226_s10, 4  ;;  %s95_s9 = int_to_ptr.vmem [resolvable:$true] %s94_s9  ;;  %s105_s11 = int_to_ptr.vmem [resolvable:$true] %s104_s11 }
  0x28   :  { %v82_v6 = vmul.f32 %v81_v4, %v79_v2  ;;  %v84_v7 = vadd.f32 %v81_v4, %v79_v2  ;;  %s171_s1 = scalar_lea.vmem %s95_s9, 128  ;;  %p176_p3 = scmp.lt.s32.totalorder %s95_s9, %s95_s9 }
  0x29   :  { %p172_p2 = scmp.ne.s32.totalorder %s95_s9, %s171_s1  ;;  %p177_p4 = scmp.lt.s32.totalorder %s171_s1, %s171_s1 }
  0x2a   :  { %v83_v8 = vadd.f32 %v82_v6, %v74_v3  ;;  %v85_v9 = vadd.f32 %v84_v7, %v76_v5 }
  0x2b   :  { %p178_p5 = por %p177_p4, %p176_p3 }
  0x2c   :  { %86 = vst [vmem:[#allocation7] sm:$0xff] %v83_v8  ;;  %87 = vst [vmem:[#allocation8] sm:$0xff] %v85_v9 }
  0x2d   :  { %p179_p6 = pnand %p178_p5, %p172_p2 }
  0x2f   :  { %182 = shalt.err (!%p179_p6)
}
  0x30   :  { %s183_s14 = scalar_lea.hbm %s297_s2, 128 }
  0x31   :  { %p184_p7 = scmp.ne.s32.totalorder %s297_s2, %s183_s14  ;;  %p187_p8 = scmp.lt.u32.totalorder %s183_s14, %s297_s2 }
  0x33   :  { %p189_p9 = pnand %p187_p8, %p184_p7 }
  0x35   :  { %192 = shalt.err (!%p189_p9)
}
  0x36   :  { %97 = dma.vmem_to_hbm [thread:$0]  %s95_s9, 128, %s297_s2, [#allocation4]  }
  0x37   :  { %s193_s21 = scalar_lea.vmem %s105_s11, 128  ;;  %p198_p11 = scmp.lt.s32.totalorder %s105_s11, %s105_s11 }
  0x38   :  { %p194_p10 = scmp.ne.s32.totalorder %s105_s11, %s193_s21  ;;  %p199_p12 = scmp.lt.s32.totalorder %s193_s21, %s193_s21 }
  0x3a   :  { %p200_p13 = por %p199_p12, %p198_p11 }
  0x3c   :  { %p201_p0 = pnand %p200_p13, %p194_p10 }
  0x3e   :  { %204 = shalt.err (!%p201_p0)
}
  0x3f   :  { %s205_s24 = scalar_lea.hbm %s298_s3, 128 }
  0x40   :  { %p206_p1 = scmp.ne.s32.totalorder %s298_s3, %s205_s24  ;;  %p209_p2 = scmp.lt.u32.totalorder %s205_s24, %s298_s3 }
  0x42   :  { %p211_p3 = pnand %p209_p2, %p206_p1 }
  0x44   :  { %214 = shalt.err (!%p211_p3)
}
  0x45   :  { %107 = dma.vmem_to_hbm [thread:$0]  %s105_s11, 128, %s298_s3, [#allocation9]  }
  0x46   :  { %219 = dma.done.wait [#allocation4], 128  }
  0x47   :  { %220 = vsyncadd [#allocation4], 4294967168 }
  0x48   :  { %221 = dma.done.wait [#allocation9], 128  }
  0x49   :  { %222 = vsyncadd [#allocation9], 4294967168 }
  0x4a   :  { %114 = vsyncpa [#allocation3], 1 }
  0x4b   :  { %115 = vsyncpa [#allocation6], 1 }
  0x4c   :  { %116 = vsyncpa [#allocation4], 1 }
  0x4d   :  { %117 = vsyncpa [#allocation9], 1 }

</bundles_post_ra>
